<compile_context>
chip_gen: v7x
topology: tpu7x:2x2x1
jax: 0.10.0
libtpu: 0.0.40
codegen_flags: <defaults>
</compile_context>

<pallas_src>
import jax
import jax.numpy as jnp
from jax import lax
from jax.experimental import pallas as pl
from jax.experimental.pallas import tpu as pltpu

IN_FEATURES = 784
OUT_FEATURES = 3

_LANE = 128
_ABS_MAX_TILE = 4096      # hard cap on rows per batch tile
_MIN_TILE = 512
_VMEM_BUDGET_FRAC = 0.45  # fraction of physical VMEM used for pipelined buffers


def _round_up(v, m):
    return ((v + m - 1) // m) * m


def _round_down(v, m):
    return (v // m) * m


def _vmem_capacity_bytes():
    """Physical VMEM of this chip; conservative fallback if the query fails."""
    try:
        return int(pltpu.get_tpu_info().vmem_capacity_bytes)
    except Exception:
        return 64 << 20  # v7x per-TC physical VMEM — the smallest of any gen


def _per_row_buffer_bytes(x_itemsize):
    # x tile: 784 lanes pad to 896, double-buffered.
    x_bytes = 2 * _round_up(IN_FEATURES, _LANE) * x_itemsize
    # output tile: 3 lanes pad to 128, f32, double-buffered.
    o_bytes = 2 * _round_up(OUT_FEATURES, _LANE) * 4
    return x_bytes + o_bytes


def _resident_bytes():
    # weight (784, 3) pads to (784, 128) f32; bias (1, 3) pads to (8, 128) f32.
    # Counted x2 (conservative: pretend they are double-buffered too).
    w = 2 * IN_FEATURES * _round_up(OUT_FEATURES, _LANE) * 4
    b = 2 * 8 * _LANE * 4
    return w + b


def _even_grid_tile(B, max_tb):
    """Tile size <= max_tb giving an even (TC-balanced) number of grid steps."""
    if B <= max_tb:
        return B
    n_pairs = pl.cdiv(B, 2 * max_tb)
    return _round_up(pl.cdiv(B, 2 * n_pairs), 16)


def _select_tiling(B, x_itemsize):
    """Pick (batch_tile, vmem_limit_bytes) from this generation's VMEM size."""
    cap = _vmem_capacity_bytes()
    budget = int(cap * _VMEM_BUDGET_FRAC) - _resident_bytes()
    per_row = _per_row_buffer_bytes(x_itemsize)
    max_tb = max(_MIN_TILE, min(_ABS_MAX_TILE,
                                _round_down(max(budget, 0) // per_row, 256)))
    tb = _even_grid_tile(B, max_tb)
    required = tb * per_row + _resident_bytes()
    # Explicit scoped-VMEM limit: enough for our buffers + headroom, well under
    # physical capacity on every generation (incl. v7x's 64 MiB).
    vmem_limit = int(min(0.7 * cap, max(32 << 20, required + (8 << 20))))
    return tb, vmem_limit


def _linear_kernel(x_ref, wt_ref, b_ref, o_ref):
    # x: (TB, 784) f32 or bf16 | wt: (784, 3) f32 | b: (1, 3) f32 | o: (TB, 3) f32
    x = x_ref[...].astype(jnp.float32)  # exact upcast of bf16 stream; no-op for f32
    acc = lax.dot_general(
        x, wt_ref[...],
        dimension_numbers=(((1,), (0,)), ((), ())),  # natural (M,K)x(K,N) on MXU
        preferred_element_type=jnp.float32,
    )
    o_ref[...] = (acc + b_ref[...]).astype(o_ref.dtype)


def one_layer_network(x, weight, bias, *, max_batch_tile=None):
    """Forward pass of OneLayerNetwork: x @ weight.T + bias.

    x:      [B, 784] float32 or bfloat16 (bf16 halves HBM traffic; accumulation
            stays float32 inside the kernel)
    weight: [3, 784] float32 (PyTorch Linear convention)
    bias:   [3]      float32
    returns [B, 3]   float32
    """
    B = x.shape[0]
    assert x.shape[1] == IN_FEATURES, x.shape
    x_itemsize = jnp.dtype(x.dtype).itemsize
    out_dtype = jnp.result_type(x.dtype, weight.dtype)  # float32 for this module

    if max_batch_tile is None:
        TB, vmem_limit = _select_tiling(B, x_itemsize)
    else:
        TB = _even_grid_tile(B, max_batch_tile)
        required = TB * _per_row_buffer_bytes(x_itemsize) + _resident_bytes()
        vmem_limit = int(max(32 << 20, required + (8 << 20)))

    grid = (pl.cdiv(B, TB),)

    # One-time glue outside the per-tile loop: (3,784)->(784,3) and (3,)->(1,3).
    w_t = weight.T
    b2d = bias.reshape(1, OUT_FEATURES)

    cost = pl.CostEstimate(
        flops=2 * B * IN_FEATURES * OUT_FEATURES,
        transcendentals=0,
        bytes_accessed=(B * IN_FEATURES * x_itemsize
                        + IN_FEATURES * OUT_FEATURES * 4
                        + B * OUT_FEATURES * jnp.dtype(out_dtype).itemsize
                        + OUT_FEATURES * 4),
    )

    return pl.pallas_call(
        _linear_kernel,
        out_shape=jax.ShapeDtypeStruct((B, OUT_FEATURES), out_dtype),
        grid_spec=pltpu.PrefetchScalarGridSpec(
            num_scalar_prefetch=0,
            grid=grid,
            in_specs=[
                # x: streamed, one batch tile per grid step (double-buffered).
                pl.BlockSpec((TB, IN_FEATURES), lambda i: (i, 0)),
                # weight.T: full block, constant index -> VMEM-resident.
                pl.BlockSpec((IN_FEATURES, OUT_FEATURES), lambda i: (0, 0)),
                # bias: full block, constant index -> VMEM-resident.
                pl.BlockSpec((1, OUT_FEATURES), lambda i: (0, 0)),
            ],
            out_specs=pl.BlockSpec((TB, OUT_FEATURES), lambda i: (i, 0)),
        ),
        compiler_params=pltpu.CompilerParams(
            # Independent batch tiles -> shard across v7x's two TensorCores.
            dimension_semantics=("parallel",),
            vmem_limit_bytes=vmem_limit,
        ),
        cost_estimate=cost,
    )(x, w_t, b2d)


if __name__ == "__main__":
    # Deterministic parameters (PyTorch Linear default init: U(-k, k), k=1/sqrt(784)).
    k = 1.0 / jnp.sqrt(jnp.float32(IN_FEATURES))
    wkey, bkey, xkey = jax.random.split(jax.random.PRNGKey(0), 3)
    weight = jax.random.uniform(
        wkey, (OUT_FEATURES, IN_FEATURES), jnp.float32, minval=-k, maxval=k)
    bias = jax.random.uniform(
        bkey, (OUT_FEATURES,), jnp.float32, minval=-k, maxval=k)

    # 1) Small batch, exact float32 path (matches PyTorch numerics).
    B = 16
    x = jax.random.normal(xkey, (B, IN_FEATURES), jnp.float32)
    out = jax.block_until_ready(one_layer_network(x, weight, bias))
    ref = x @ weight.T + bias
    assert out.shape == (B, OUT_FEATURES), out.shape
    assert jnp.allclose(out, ref, atol=1e-4, rtol=1e-4), "mismatch (f32 path)"

    # 2) bf16-streamed x (halved HBM bytes), f32 accumulation in-kernel.
    x_bf16 = x.astype(jnp.bfloat16)  # in a real model, produced upstream in bf16
    out_bf = jax.block_until_ready(one_layer_network(x_bf16, weight, bias))
    ref_bf = x_bf16.astype(jnp.float32) @ weight.T + bias
    assert out_bf.dtype == jnp.float32
    assert jnp.allclose(out_bf, ref_bf, atol=1e-3, rtol=1e-3), "mismatch (bf16 path)"
    assert jnp.allclose(out_bf, ref, atol=5e-2, rtol=5e-2), "bf16 path drifted too far"

    # 3) Multi-tile, ragged, even-grid path (small shapes; override the tile cap
    #    so the tiled/double-buffered code path is exercised: B=200, TB=64 -> 4 steps).
    B2 = 200
    x2 = jax.random.normal(jax.random.fold_in(xkey, 1), (B2, IN_FEATURES), jnp.float32)
    out2 = jax.block_until_ready(
        one_layer_network(x2, weight, bias, max_batch_tile=64))
    ref2 = x2 @ weight.T + bias
    assert out2.shape == (B2, OUT_FEATURES), out2.shape
    assert jnp.allclose(out2, ref2, atol=1e-4, rtol=1e-4), "mismatch (tiled path)"

    print("KERNEL_OK")
</pallas_src>

<mosaic_0001>
module attributes {stable_mosaic.version = 11 : i64} {
  func.func @_linear_kernel(%arg0: i32, %arg1: memref<16x784xf32, #tpu.memory_space<vmem>>, %arg2: memref<784x3xf32, #tpu.memory_space<vmem>>, %arg3: memref<1x3xf32, #tpu.memory_space<vmem>>, %arg4: memref<16x3xf32, #tpu.memory_space<vmem>>) attributes {dimension_semantics = [#tpu.dimension_semantics<parallel>], iteration_bounds = array<i64: 1>, scalar_prefetch = 0 : i64, scratch_operands = 0 : i64, tpu.core_type = #tpu.core_type<tc>, window_params = [{transform_indices = @transform_0, window_bounds = array<i64: 16, 784>}, {pipeline_mode = #tpu.pipeline_mode<synchronous>, transform_indices = @transform_1, window_bounds = array<i64: 784, 3>}, {pipeline_mode = #tpu.pipeline_mode<synchronous>, transform_indices = @transform_2, window_bounds = array<i64: 1, 3>}, {transform_indices = @transform_3, window_bounds = array<i64: 16, 3>}]} {
    %c0 = arith.constant 0 : index
    %c0_0 = arith.constant 0 : index
    %0 = vector.load %arg1[%c0, %c0_0] : memref<16x784xf32, #tpu.memory_space<vmem>>, vector<16x784xf32>
    %c0_1 = arith.constant 0 : index
    %c0_2 = arith.constant 0 : index
    %1 = vector.load %arg2[%c0_1, %c0_2] : memref<784x3xf32, #tpu.memory_space<vmem>>, vector<784x3xf32>
    %cst = arith.constant dense<0.000000e+00> : vector<16x3xf32>
    %2 = tpu.matmul %0, %1, %cst {dimension_numbers = #tpu.dot_dimension_numbers<[1], [0], [0], [1], [0, 0, 1, 1], [], []>} : vector<16x784xf32>, vector<784x3xf32>, vector<16x3xf32> -> vector<16x3xf32>
    %c0_3 = arith.constant 0 : index
    %c0_4 = arith.constant 0 : index
    %3 = vector.load %arg3[%c0_3, %c0_4] : memref<1x3xf32, #tpu.memory_space<vmem>>, vector<1x3xf32>
    %4 = vector.broadcast %3 : vector<1x3xf32> to vector<16x3xf32>
    %5 = arith.addf %2, %4 : vector<16x3xf32>
    %c0_5 = arith.constant 0 : index
    %c0_6 = arith.constant 0 : index
    %6 = vector.load %arg4[%c0_5, %c0_6] : memref<16x3xf32, #tpu.memory_space<vmem>>, vector<16x3xf32>
    tpu.vector_store %arg4[%c0_5, %c0_6], %5 {strides = array<i32>} : memref<16x3xf32, #tpu.memory_space<vmem>>, vector<16x3xf32>,
    return
  }
  func.func @transform_0(%arg0: i32) -> (i32, i32) {
    %c0_i32 = arith.constant 0 : i32
    %c0_i32_0 = arith.constant 0 : i32
    return %arg0, %c0_i32 : i32, i32
  }
  func.func @transform_1(%arg0: i32) -> (i32, i32) {
    %c0_i32 = arith.constant 0 : i32
    %c0_i32_0 = arith.constant 0 : i32
    %c0_i32_1 = arith.constant 0 : i32
    return %c0_i32, %c0_i32_0 : i32, i32
  }
  func.func @transform_2(%arg0: i32) -> (i32, i32) {
    %c0_i32 = arith.constant 0 : i32
    %c0_i32_0 = arith.constant 0 : i32
    %c0_i32_1 = arith.constant 0 : i32
    return %c0_i32, %c0_i32_0 : i32, i32
  }
  func.func @transform_3(%arg0: i32) -> (i32, i32) {
    %c0_i32 = arith.constant 0 : i32
    %c0_i32_0 = arith.constant 0 : i32
    return %arg0, %c0_i32 : i32, i32
  }
}

</mosaic_0001>

<bundles_post_ra>
// kernel: tpu_custom_call.1
= control target key start
LH: loop header
LB: loop body
LE: loop exit
PB: predicated region body
PF: predicated region fallthrough
CT: control target
= control target key end

     0   :  { %vm133_vm0 = vcmask 130048   ;;  %vm440_vm1 = vcmask 23552   ;;  %s1040_s1 = inlined_call_operand.vmem [shape: f32[784,3], index: 1, kind: input, shape index: {}]   ;;  %s1041_s0 = inlined_call_operand.vmem [shape: f32[16,784], index: 0, kind: input, shape index: {}]   ;;  %s1042_s2 = inlined_call_operand.vmem [shape: f32[1,3], index: 2, kind: input, shape index: {}]   ;;  %s1043_s3 = inlined_call_operand.vmem [shape: f32[16,3], index: 3, kind: output, shape index: {}]  }
   0x1   :  { %v44_v0 = vld [vmem:[%s1040_s1 + $0x80] sm:$0xff]  ;;  %v45_v1 = vld [vmem:[%s1040_s1 + $0x88] sm:$0xff]  ;;  %v46_v11 = vld [vmem:[%s1040_s1 + $0x90] sm:$0xff] }
   0x2   :  { %v28_v2 = vld [vmem:[%s1040_s1] sm:$0xff]  ;;  %v575_v3 = vpack.c.bf16 %v45_v1, %v44_v0  ;;  %v29_v4 = vld [vmem:[%s1040_s1 + $0x8] sm:$0xff]  ;;  %v47_v13 = vld [vmem:[%s1040_s1 + $0x98] sm:$0xff] }
   0x3   :  { %v76_v5 = vld [vmem:[%s1040_s1 + $0x180] sm:$0xff]  ;;  %v77_v6 = vld [vmem:[%s1040_s1 + $0x188] sm:$0xff]  ;;  %v577_v7 = vpack.c.bf16 %v29_v4, %v28_v2  ;;  %v30_v14 = vld [vmem:[%s1040_s1 + $0x10] sm:$0xff]  ;;  %v579_v16 = vpack.c.bf16 %v47_v13, %v46_v11 }
   0x4   :  { %v607_v8 = vpack.c.bf16 %v77_v6, %v76_v5  ;;  %v60_v9 = vld [vmem:[%s1040_s1 + $0x100] sm:$0xff]  ;;  %v61_v10 = vld [vmem:[%s1040_s1 + $0x108] sm:$0xff]  ;;  %576 = vmatprep.subr.bf16.mxu0 %v575_v3  ;;  %v31_v15 = vld [vmem:[%s1040_s1 + $0x18] sm:$0xff] }
   0x5   :  { %v609_v12 = vpack.c.bf16 %v61_v10, %v60_v9  ;;  %578 = vmatpush3.bf16.msra.mxu0 %v577_v7  ;;  %v581_v17 = vpack.c.bf16 %v31_v15, %v30_v14  ;;  %v78_v18 = vld [vmem:[%s1040_s1 + $0x190] sm:$0xff]  ;;  %v79_v19 = vld [vmem:[%s1040_s1 + $0x198] sm:$0xff]  ;;  %v48_v23 = vld [vmem:[%s1040_s1 + $0xa0] sm:$0xff] }
   0x6   :  { %608 = vmatprep.subr.bf16.mxu1 %v607_v8  ;;  %v62_v20 = vld [vmem:[%s1040_s1 + $0x110] sm:$0xff]  ;;  %v611_v21 = vpack.c.bf16 %v79_v19, %v78_v18  ;;  %v63_v22 = vld [vmem:[%s1040_s1 + $0x118] sm:$0xff]  ;;  %v49_v24 = vld [vmem:[%s1040_s1 + $0xa8] sm:$0xff]  ;;  %580 = vmatprep.subr.bf16.mxu0 %v579_v16 }
   0x7   :  { %610 = vmatpush3.bf16.msra.mxu1 %v609_v12  ;;  %v613_v25 = vpack.c.bf16 %v63_v22, %v62_v20  ;;  %v583_v26 = vpack.c.bf16 %v49_v24, %v48_v23  ;;  %v32_v27 = vld [vmem:[%s1040_s1 + $0x20] sm:$0xff]  ;;  %v33_v28 = vld [vmem:[%s1040_s1 + $0x28] sm:$0xff]  ;;  %v50_v35 = vld [vmem:[%s1040_s1 + $0xb0] sm:$0xff] }
   0x8   :  { %v80_v29 = vld [vmem:[%s1040_s1 + $0x1a0] sm:$0xff]  ;;  %612 = vmatprep.subr.bf16.mxu1 %v611_v21  ;;  %v81_v30 = vld [vmem:[%s1040_s1 + $0x1a8] sm:$0xff]  ;;  %v585_v33 = vpack.c.bf16 %v33_v28, %v32_v27  ;;  %v51_v36 = vld [vmem:[%s1040_s1 + $0xb8] sm:$0xff] }
   0x9   :  { %v64_v31 = vld [vmem:[%s1040_s1 + $0x120] sm:$0xff]  ;;  %v65_v32 = vld [vmem:[%s1040_s1 + $0x128] sm:$0xff]  ;;  %582 = vmatpush3.bf16.msra.mxu0 %v581_v17  ;;  %v615_v34 = vpack.c.bf16 %v81_v30, %v80_v29  ;;  %v34_v37 = vld [vmem:[%s1040_s1 + $0x30] sm:$0xff]  ;;  %v587_v39 = vpack.c.bf16 %v51_v36, %v50_v35 }
   0xa   :  { %584 = vmatprep.subr.bf16.mxu0 %v583_v26  ;;  %v617_v38 = vpack.c.bf16 %v65_v32, %v64_v31  ;;  %v35_v40 = vld [vmem:[%s1040_s1 + $0x38] sm:$0xff]  ;;  %v82_v41 = vld [vmem:[%s1040_s1 + $0x1b0] sm:$0xff]  ;;  %v52_v46 = vld [vmem:[%s1040_s1 + $0xc0] sm:$0xff] }
   0xb   :  { %614 = vmatpush3.bf16.msra.mxu1 %v613_v25  ;;  %v83_v42 = vld [vmem:[%s1040_s1 + $0x1b8] sm:$0xff]  ;;  %v66_v44 = vld [vmem:[%s1040_s1 + $0x130] sm:$0xff]  ;;  %v53_v47 = vld [vmem:[%s1040_s1 + $0xc8] sm:$0xff]  ;;  %v589_v48 = vpack.c.bf16 %v35_v40, %v34_v37 }
   0xc   :  { %616 = vmatprep.subr.bf16.mxu1 %v615_v34  ;;  %v619_v43 = vpack.c.bf16 %v83_v42, %v82_v41  ;;  %v67_v45 = vld [vmem:[%s1040_s1 + $0x138] sm:$0xff]  ;;  %v84_v49 = vld [vmem:[%s1040_s1 + $0x1c0] sm:$0xff]  ;;  %v85_v50 = vld [vmem:[%s1040_s1 + $0x1c8] sm:$0xff]  ;;  %v591_v52 = vpack.c.bf16 %v53_v47, %v52_v46 }
   0xd   :  { %586 = vmatpush3.bf16.msra.mxu0 %v585_v33  ;;  %v621_v51 = vpack.c.bf16 %v67_v45, %v66_v44  ;;  %v36_v53 = vld [vmem:[%s1040_s1 + $0x40] sm:$0xff]  ;;  %v37_v54 = vld [vmem:[%s1040_s1 + $0x48] sm:$0xff]  ;;  %v623_v56 = vpack.c.bf16 %v85_v50, %v84_v49  ;;  %v54_v58 = vld [vmem:[%s1040_s1 + $0xd0] sm:$0xff] }
   0xe   :  { %588 = vmatprep.subr.bf16.mxu0 %v587_v39  ;;  %v68_v55 = vld [vmem:[%s1040_s1 + $0x140] sm:$0xff]  ;;  %v69_v57 = vld [vmem:[%s1040_s1 + $0x148] sm:$0xff]  ;;  %v55_v59 = vld [vmem:[%s1040_s1 + $0xd8] sm:$0xff]  ;;  %v593_v62 = vpack.c.bf16 %v37_v54, %v36_v53 }
   0xf   :  { %618 = vmatpush3.bf16.msra.mxu1 %v617_v38  ;;  %v86_v60 = vld [vmem:[%s1040_s1 + $0x1d0] sm:$0xff]  ;;  %v87_v61 = vld [vmem:[%s1040_s1 + $0x1d8] sm:$0xff]  ;;  %v625_v63 = vpack.c.bf16 %v69_v57, %v68_v55  ;;  %v595_v0 = vpack.c.bf16 %v55_v59, %v54_v58  ;;  %v56_v6 = vld [vmem:[%s1040_s1 + $0xe0] sm:$0xff] }
  0x10   :  { %620 = vmatprep.subr.bf16.mxu1 %v619_v43  ;;  %v38_v1 = vld [vmem:[%s1040_s1 + $0x50] sm:$0xff]  ;;  %v39_v2 = vld [vmem:[%s1040_s1 + $0x58] sm:$0xff]  ;;  %v627_v4 = vpack.c.bf16 %v87_v61, %v86_v60  ;;  %v57_v7 = vld [vmem:[%s1040_s1 + $0xe8] sm:$0xff] }
  0x11   :  { %590 = vmatpush3.bf16.msra.mxu0 %v589_v48  ;;  %v70_v3 = vld [vmem:[%s1040_s1 + $0x150] sm:$0xff]  ;;  %v71_v5 = vld [vmem:[%s1040_s1 + $0x158] sm:$0xff]  ;;  %v88_v8 = vld [vmem:[%s1040_s1 + $0x1e0] sm:$0xff]  ;;  %v597_v10 = vpack.c.bf16 %v39_v2, %v38_v1  ;;  %v599_v14 = vpack.c.bf16 %v57_v7, %v56_v6 }
  0x12   :  { %592 = vmatprep.subr.bf16.mxu0 %v591_v52  ;;  %v89_v9 = vld [vmem:[%s1040_s1 + $0x1e8] sm:$0xff]  ;;  %v40_v11 = vld [vmem:[%s1040_s1 + $0x60] sm:$0xff]  ;;  %v629_v13 = vpack.c.bf16 %v71_v5, %v70_v3  ;;  %v58_v19 = vld [vmem:[%s1040_s1 + $0xf0] sm:$0xff] }
  0x13   :  { %622 = vmatpush3.bf16.msra.mxu1 %v621_v51  ;;  %v15_v12 = vld [vmem:[%s1041_s0 + $0x8] sm:$0xff]  ;;  %v72_v16 = vld [vmem:[%s1040_s1 + $0x160] sm:$0xff]  ;;  %v631_v18 = vpack.c.bf16 %v89_v9, %v88_v8  ;;  %v59_v20 = vld [vmem:[%s1040_s1 + $0xf8] sm:$0xff] }
  0x14   :  { %624 = vmatprep.subr.bf16.mxu1 %v623_v56  ;;  %v41_v15 = vld [vmem:[%s1040_s1 + $0x68] sm:$0xff]  ;;  %204 = vmatprep.mubr.f32.mxu0 %v15_v12  ;;  %v17_v21 = vld [vmem:[%s1041_s0 + $0x18] sm:$0xff]  ;;  %v90_v22 = vld [vmem:[%s1040_s1 + $0x1f0] sm:$0xff]  ;;  %v603_v26 = vpack.c.bf16 %v59_v20, %v58_v19 }
  0x15   :  { %594 = vmatpush3.bf16.msra.mxu0 %v593_v62  ;;  %v73_v17 = vld [vmem:[%s1040_s1 + $0x168] sm:$0xff]  ;;  %v91_v23 = vld [vmem:[%s1040_s1 + $0x1f8] sm:$0xff]  ;;  %279 = vmatprep.mubr.f32.mxu1 %v17_v21  ;;  %v601_v24 = vpack.c.bf16 %v41_v15, %v40_v11  ;;  %v42_v27 = vld [vmem:[%s1040_s1 + $0x70] sm:$0xff] }
  0x16   :  { %596 = vmatprep.subr.bf16.mxu0 %v595_v0  ;;  %v633_v25 = vpack.c.bf16 %v73_v17, %v72_v16  ;;  %v43_v28 = vld [vmem:[%s1040_s1 + $0x78] sm:$0xff]  ;;  %v74_v29 = vld [vmem:[%s1040_s1 + $0x170] sm:$0xff]  ;;  %v635_v30 = vpack.c.bf16 %v91_v23, %v90_v22  ;;  %v108_v32 = vld [vmem:[%s1040_s1 + $0x280] sm:$0xff] }
  0x17   :  { %626 = vmatpush3.bf16.msra.mxu1 %v625_v63  ;;  %v75_v31 = vld [vmem:[%s1040_s1 + $0x178] sm:$0xff]  ;;  %v109_v33 = vld [vmem:[%s1040_s1 + $0x288] sm:$0xff]  ;;  %v605_v34 = vpack.c.bf16 %v43_v28, %v42_v27  ;;  %v92_v37 = vld [vmem:[%s1040_s1 + $0x200] sm:$0xff] }
  0x18   :  { %628 = vmatprep.subr.bf16.mxu1 %v627_v4  ;;  %v637_v35 = vpack.c.bf16 %v75_v31, %v74_v29  ;;  %v639_v36 = vpack.c.bf16 %v109_v33, %v108_v32  ;;  %v93_v38 = vld [vmem:[%s1040_s1 + $0x208] sm:$0xff]  ;;  %v110_v39 = vld [vmem:[%s1040_s1 + $0x290] sm:$0xff]  ;;  %v111_v40 = vld [vmem:[%s1040_s1 + $0x298] sm:$0xff] }
  0x19   :  { %598 = vmatpush3.bf16.msra.mxu0 %v597_v10  ;;  %v14_v41 = vld [vmem:[%s1041_s0] sm:$0xff]  ;;  %v641_v42 = vpack.c.bf16 %v93_v38, %v92_v37  ;;  %v16_v43 = vld [vmem:[%s1041_s0 + $0x10] sm:$0xff]  ;;  %v643_v44 = vpack.c.bf16 %v111_v40, %v110_v39  ;;  %v95_v46 = vld [vmem:[%s1040_s1 + $0x218] sm:$0xff] }
  0x1a   :  { %600 = vmatprep.subr.bf16.mxu0 %v599_v14  ;;  %v94_v45 = vld [vmem:[%s1040_s1 + $0x210] sm:$0xff]  ;;  %v112_v47 = vld [vmem:[%s1040_s1 + $0x2a0] sm:$0xff]  ;;  %v113_v48 = vld [vmem:[%s1040_s1 + $0x2a8] sm:$0xff] }
  0x1b   :  { %630 = vmatpush3.bf16.msra.mxu1 %v629_v13  ;;  %v22_v49 = vld [vmem:[%s1041_s0 + $0x40] sm:$0xff]  ;;  %v24_v50 = vld [vmem:[%s1041_s0 + $0x50] sm:$0xff]  ;;  %v125_v52 = vld [vmem:[%s1040_s1 + $0x308] sm:$0xff]  ;;  %v645_v53 = vpack.c.bf16 %v95_v46, %v94_v45  ;;  %v647_v56 = vpack.c.bf16 %v113_v48, %v112_v47 }
  0x1c   :  { %632 = vmatprep.subr.bf16.mxu1 %v631_v18  ;;  %v124_v51 = vld [vmem:[%s1040_s1 + $0x300] sm:$0xff]  ;;  %v21_v54 = vld [vmem:[%s1041_s0 + $0x38] sm:$0xff]  ;;  %v97_v58 = vld [vmem:[%s1040_s1 + $0x228] sm:$0xff] }
  0x1d   :  { %602 = vmatpush3.bf16.msra.mxu0 %v601_v24  ;;  %v671_v55 = vpack.c.bf16 %v125_v52, %v124_v51  ;;  %v96_v57 = vld [vmem:[%s1040_s1 + $0x220] sm:$0xff]  ;;  %v23_v59 = vld [vmem:[%s1041_s0 + $0x48] sm:$0xff]  ;;  %v114_v60 = vld [vmem:[%s1040_s1 + $0x2b0] sm:$0xff] }
  0x1e   :  { %604 = vmatprep.subr.bf16.mxu0 %v603_v26  ;;  %v115_v61 = vld [vmem:[%s1040_s1 + $0x2b8] sm:$0xff]  ;;  %v19_v62 = vld [vmem:[%s1041_s0 + $0x28] sm:$0xff]  ;;  %v20_v63 = vld [vmem:[%s1041_s0 + $0x30] sm:$0xff]  ;;  %v649_v0 = vpack.c.bf16 %v97_v58, %v96_v57 }
  0x1f   :  { %634 = vmatpush3.bf16.msra.mxu1 %v633_v25  ;;  %v651_v1 = vpack.c.bf16 %v115_v61, %v114_v60  ;;  %v98_v2 = vld [vmem:[%s1040_s1 + $0x230] sm:$0xff]  ;;  %v99_v3 = vld [vmem:[%s1040_s1 + $0x238] sm:$0xff]  ;;  %v27_v4 = vld [vmem:[%s1041_s0 + $0x68] sm:$0xff] }
  0x20   :  { %636 = vmatprep.subr.bf16.mxu1 %v635_v30  ;;  %v116_v5 = vld [vmem:[%s1040_s1 + $0x2c0] sm:$0xff]  ;;  %v117_v6 = vld [vmem:[%s1040_s1 + $0x2c8] sm:$0xff]  ;;  %v653_v7 = vpack.c.bf16 %v99_v3, %v98_v2  ;;  %v118_v11 = vld [vmem:[%s1040_s1 + $0x2d0] sm:$0xff] }
  0x21   :  { %606 = vmatpush3.bf16.msra.mxu0 %v605_v34  ;;  %v655_v8 = vpack.c.bf16 %v117_v6, %v116_v5  ;;  %v100_v9 = vld [vmem:[%s1040_s1 + $0x240] sm:$0xff]  ;;  %v101_v10 = vld [vmem:[%s1040_s1 + $0x248] sm:$0xff]  ;;  %v119_v12 = vld [vmem:[%s1040_s1 + $0x2d8] sm:$0xff] }
  0x22   :  { %640 = vmatprep.subr.bf16.mxu0 %v639_v36  ;;  %v657_v13 = vpack.c.bf16 %v101_v10, %v100_v9  ;;  %v659_v14 = vpack.c.bf16 %v119_v12, %v118_v11  ;;  %v102_v15 = vld [vmem:[%s1040_s1 + $0x250] sm:$0xff]  ;;  %v103_v16 = vld [vmem:[%s1040_s1 + $0x258] sm:$0xff]  ;;  %v120_v17 = vld [vmem:[%s1040_s1 + $0x2e0] sm:$0xff] }
  0x23   :  { %638 = vmatpush3.bf16.msra.mxu1 %v637_v35  ;;  %v121_v18 = vld [vmem:[%s1040_s1 + $0x2e8] sm:$0xff]  ;;  %v661_v19 = vpack.c.bf16 %v103_v16, %v102_v15  ;;  %v104_v21 = vld [vmem:[%s1040_s1 + $0x260] sm:$0xff]  ;;  %v122_v23 = vld [vmem:[%s1040_s1 + $0x2f0] sm:$0xff] }
  0x24   :  { %205 = vmatmul.mubr.f32.vlgmr.msra.gmra.mrb[0].mxu0 %v14_v41  ;;  %672 = vmatprep.subr.bf16.mxu1 %v671_v55  ;;  %v663_v20 = vpack.c.bf16 %v121_v18, %v120_v17  ;;  %v105_v22 = vld [vmem:[%s1040_s1 + $0x268] sm:$0xff]  ;;  %v123_v24 = vld [vmem:[%s1040_s1 + $0x2f8] sm:$0xff]  ;;  %v106_v27 = vld [vmem:[%s1040_s1 + $0x270] sm:$0xff] }
  0x25   :  { %642 = vmatpush3.bf16.msra.mxu0 %v641_v42  ;;  %209 = vmatprep.mubr.f32.mxu0 %v22_v49  ;;  %v665_v25 = vpack.c.bf16 %v105_v22, %v104_v21  ;;  %v667_v26 = vpack.c.bf16 %v123_v24, %v122_v23  ;;  %v107_v28 = vld [vmem:[%s1040_s1 + $0x278] sm:$0xff]  ;;  %v18_v30 = vld [vmem:[%s1041_s0 + $0x20] sm:$0xff] }
  0x26   :  { %280 = vmatmul.mubr.f32.vlgmr.msra.gmra.mrb[0].mxu1 %v16_v43  ;;  %644 = vmatprep.subr.bf16.mxu0 %v643_v44  ;;  %v669_v29 = vpack.c.bf16 %v107_v28, %v106_v27  ;;  %v26_v31 = vld [vmem:[%s1041_s0 + $0x60] sm:$0xff]  ;;  %v25_v32 = vld [vmem:[%s1041_s0 + $0x58] sm:$0xff] }
  0x27   :  { %284 = vmatprep.mubr.f32.mxu1 %v24_v50  ;;  %674 = vmatpush3.bf16.msra.mxu1 %v671_v55  ;;  %v447_v34 = vld [vmem:[%s1042_s2] ss:$0 sm:$0xff] }
  0x28   :  { %210 = vmatmul.mubr.f32.gmra.mrb[2].mxu0 %v21_v54 }
  0x29   :  { %646 = vmatpush3.bf16.msra.mxu0 %v645_v53  ;;  %354 = vmatprep.mubr.f32.mxu0 %v19_v62 }
  0x2a   :  { %285 = vmatmul.mubr.f32.gmra.mrb[2].mxu1 %v23_v59  ;;  %648 = vmatprep.subr.bf16.mxu0 %v647_v56 }
  0x2b   :  { %572 = vmatprep.mubr.msk.f32.mxu1 %vm133_vm0, %v20_v63 }
  0x2d   :  { %650 = vmatpush3.bf16.msra.mxu0 %v649_v0 }
  0x2e   :  { %573 = vmatmul.mubr.msk.f32.vlgmr.msra.gmra.mrb[4].mxu1 %vm133_vm0, %v27_v4  ;;  %652 = vmatprep.subr.bf16.mxu0 %v651_v1 }
  0x31   :  { %654 = vmatpush3.bf16.msra.mxu0 %v653_v7 }
  0x32   :  { %656 = vmatprep.subr.bf16.mxu0 %v655_v8 }
  0x35   :  { %658 = vmatpush3.bf16.msra.mxu0 %v657_v13 }
  0x36   :  { %660 = vmatprep.subr.bf16.mxu0 %v659_v14 }
  0x39   :  { %662 = vmatpush3.bf16.msra.mxu0 %v661_v19 }
  0x3a   :  { %664 = vmatprep.subr.bf16.mxu0 %v663_v20 }
  0x3d   :  { %666 = vmatpush3.bf16.msra.mxu0 %v665_v25 }
  0x3e   :  { %668 = vmatprep.subr.bf16.mxu0 %v667_v26 }
  0x41   :  { %670 = vmatpush3.bf16.msra.mxu0 %v669_v29 }
  0x44   :  { %355 = vmatmul.mubr.f32.vlgmr.msra.gmra.mrb[4].mxu0 %v18_v30 }
  0x45   :  { %359 = vmatprep.mubr.f32.mxu0 %v26_v31 }
  0x48   :  { %360 = vmatmul.mubr.f32.gmra.mrb[6].mxu0 %v25_v32 }
  0xf7   :  { %v482_v33 = vpop.f32.mrb[0].mxu0 }
  0xf8   :  { %v483_v35 = vpop.f32.mrb[1].mxu0 }
  0xf9   :  { %v520_v36 = vpop.f32.mrb[0].mxu1  ;;  %v484_v37 = vadd.f32 %v483_v35, %v482_v33 }
  0xfa   :  { %v521_v38 = vpop.f32.mrb[1].mxu1 }
  0xfb   :  { %v522_v39 = vadd.f32 %v521_v38, %v520_v36  ;;  %v207_v40 = vadd.f32 %v484_v37, %v447_v34  ;;  %v485_v41 = vpop.f32.mrb[2].mxu0 }
  0xfc   :  { %v486_v42 = vpop.f32.mrb[3].mxu0 }
  0xfd   :  { %v523_v43 = vpop.f32.mrb[2].mxu1  ;;  %v282_v44 = vadd.f32 %v522_v39, %v207_v40  ;;  %v487_v45 = vadd.f32 %v486_v42, %v485_v41 }
  0xfe   :  { %v524_v46 = vpop.f32.mrb[3].mxu1 }
  0xff   :  { %v525_v47 = vadd.f32 %v524_v46, %v523_v43  ;;  %v212_v48 = vadd.f32 %v487_v45, %v447_v34 }
 0x101   :  { %v574_v49 = vpop.f32.mrb[4].mxu1  ;;  %v287_v50 = vadd.f32 %v525_v47, %v212_v48 }
 0x102   :  { %v431_v51 = vpop.f32.mrb[5].mxu1 }
 0x117   :  { %v558_v52 = vpop.f32.mrb[4].mxu0 }
 0x118   :  { %v559_v53 = vpop.f32.mrb[5].mxu0 }
 0x119   :  { %v560_v54 = vadd.f32 %v559_v53, %v558_v52 }
 0x11b   :  { %v561_v55 = vpop.f32.mrb[6].mxu0  ;;  %v357_v56 = vadd.f32 %v560_v54, %v282_v44 }
 0x11c   :  { %v562_v57 = vpop.f32.mrb[7].mxu0 }
 0x11d   :  { %v563_v58 = vadd.f32 %v562_v57, %v561_v55  ;;  %v432_v59 = vadd.f32 %v431_v51, %v357_v56 }
 0x11f   :  { %v362_v60 = vadd.f32 %v563_v58, %v287_v50  ;;  %441 = vst.msk [vmem:[%s1043_s3] sm:$0xff] %vm440_vm1, %v432_v59 }
 0x121   :  { %v437_v61 = vadd.f32 %v574_v49, %v362_v60 }
 0x123   :  { %442 = vst.msk [vmem:[%s1043_s3 + $0x8] sm:$0xff] %vm440_vm1, %v437_v61 }

</bundles_post_ra>
